<compile_context>
chip_gen: v6e
topology: v6e:2x2x1
jax: 0.10.0
libtpu: 0.0.40
codegen_flags: <defaults>
</compile_context>

<pallas_src>
import functools
import math

import jax
import jax.numpy as jnp
from jax.experimental import pallas as pl
from jax.experimental.pallas import tpu as pltpu


# ----------------------------------------------------------------------------
# Helpers
# ----------------------------------------------------------------------------

def _round_up(x, m):
    return ((x + m - 1) // m) * m


def _cdiv(a, b):
    return (a + b - 1) // b


def _sublane_pack(dtype):
    # Sublane packing: f32 -> 8, bf16 -> 16, int8/fp8 -> 32.
    return max(8, 32 // jnp.dtype(dtype).itemsize)


# ----------------------------------------------------------------------------
# Kernel
# ----------------------------------------------------------------------------

def _svd_intermediate_kernel(x_ref, wu_ref, wv_ref, b_ref, o_ref, *, act):
    """Fused  act((x @ Wu) @ Wv + b)  for one token tile.

    x_ref  : [tm, H]    (streamed token tile)
    wu_ref : [H,  Rp]   (resident)
    wv_ref : [Rp, I]    (resident)
    b_ref  : [1,  I]    (resident, f32)
    o_ref  : [tm, I]    (lane-dense output tile)
    """
    # Stage 1: u = x @ Wu  (MXU, f32 accumulation).  The rank-Rp intermediate
    # never leaves VMEM / vregs.
    u = jnp.dot(x_ref[...], wu_ref[...], preferred_element_type=jnp.float32)

    # Stage 2: y = u @ Wv + b.  Cast the LHS back to the (bf16) compute dtype so
    # the MXU takes its fast single-pass path instead of the multi-pass f32 path.
    y = jnp.dot(u.astype(wv_ref.dtype), wv_ref[...],
                preferred_element_type=jnp.float32)
    y = y + b_ref[...].astype(jnp.float32)

    if act == "gelu":
        # Exact (erf-based) gelu — matches PyTorch / BERT ACT2FN["gelu"].
        y = 0.5 * y * (1.0 + jax.lax.erf(y * (1.0 / math.sqrt(2.0))))
    elif act in ("gelu_tanh", "gelu_new"):
        # tanh approximation: EUP op, nearly free under the memory bound.
        y = jax.nn.gelu(y, approximate=True)
    elif act == "relu":
        y = jnp.maximum(y, 0.0)
    else:
        raise ValueError(f"unsupported activation: {act}")

    o_ref[...] = y.astype(o_ref.dtype)


# ----------------------------------------------------------------------------
# Wrapper
# ----------------------------------------------------------------------------

def bert_intermediate_svd(hidden_states, wu, wv, bv, *, act="gelu",
                          compute_dtype=jnp.bfloat16, out_dtype=None):
    """hidden_states: [..., H]; wu: [H, R]; wv: [R, I]; bv: [I] -> [..., I].

    compute_dtype: dtype for x / Wu / Wv on the MXU (accumulation stays f32).
    out_dtype:     output dtype (defaults to compute_dtype).
    """
    # TODO(synk): a callable config.hidden_act (arbitrary Python activation) is not
    # supported; pass one of "gelu" | "gelu_tanh" | "relu".
    *lead, H = hidden_states.shape
    R = wu.shape[1]
    I = wv.shape[1]
    out_dtype = compute_dtype if out_dtype is None else out_dtype

    x = hidden_states.reshape(-1, H)
    M = x.shape[0]

    # ---- Rank padding: pad R up to a multiple of 128 (lane dim of u / contraction
    # dim of stage 2).  Zero columns of Wu / zero rows of Wv are numerically inert.
    Rp = _round_up(R, 128)
    if Rp != R:
        wu = jnp.pad(wu, ((0, 0), (0, Rp - R)))
        wv = jnp.pad(wv, ((0, Rp - R), (0, 0)))

    x_bpe = jnp.dtype(compute_dtype).itemsize
    w_bpe = x_bpe
    o_bpe = jnp.dtype(out_dtype).itemsize

    # ---- Generation-aware tile sizing from actual VMEM capacity.
    try:
        vmem_cap = int(pltpu.get_tpu_info().vmem_capacity_bytes)
    except Exception:
        vmem_cap = 64 << 20  # v7x-safe fallback

    # Resident weights (counted double-buffered so the limit stays honest even if the
    # single-buffer pipeline_mode below is unavailable).
    weight_bytes = 2 * (H * Rp * w_bpe + Rp * I * w_bpe + I * 4)
    # Per token row: double-buffered x / out tiles + in-kernel f32 temporaries
    # (u in f32 + bf16, y in f32 + one activation temp).
    per_row = (2 * (H * x_bpe + I * o_bpe)
               + Rp * 4 + Rp * x_bpe
               + 2 * I * 4)
    align = max(_sublane_pack(compute_dtype), _sublane_pack(out_dtype))

    budget = max((vmem_cap // 2) - weight_bytes, 1 << 20)
    cap = min(budget // per_row, 2048)
    if cap >= 256:
        cap = (cap // 256) * 256           # MXU-friendly multiple of 256
    else:
        cap = max(align, (cap // align) * align)

    # Guarantee >= 2 grid steps whenever M allows so the "parallel" token axis can
    # shard across v7x's two TensorCores.
    tm = max(align, min(cap, _round_up(_cdiv(M, 2), align)))
    M_pad = _round_up(M, tm)
    grid_m = M_pad // tm

    # ---- Ragged M: pad with zero token rows (sliced off afterwards) rather than
    # degrading to tiny divisor tiles.
    if M_pad != M:
        x = jnp.pad(x, ((0, M_pad - M), (0, 0)))

    x_c = x.astype(compute_dtype)
    wu_c = wu.astype(compute_dtype)
    wv_c = wv.astype(compute_dtype)
    b_c = bv.reshape(1, I).astype(jnp.float32)

    # Honest VMEM limit: actual working set + a few MiB headroom, clamped to capacity.
    vmem_need = tm * per_row + weight_bytes
    vmem_limit = int(min(vmem_need + (4 << 20), vmem_cap))

    cost = pl.CostEstimate(
        flops=2 * M_pad * H * Rp + 2 * M_pad * Rp * I,
        transcendentals=M_pad * I if act.startswith("gelu") else 0,
        # x read + output write dominate; resident weights / bias are fetched once.
        bytes_accessed=(M_pad * H * x_bpe + M_pad * I * o_bpe
                        + H * Rp * w_bpe + Rp * I * w_bpe + I * 4),
    )

    kern = functools.partial(_svd_intermediate_kernel, act=act)

    def _run(single_buffer_weights):
        resident_kw = ({"pipeline_mode": pl.Buffered(1)}
                       if single_buffer_weights else {})
        in_specs = [
            pl.BlockSpec((tm, H), lambda i: (i, 0)),                   # x : streamed
            pl.BlockSpec((H, Rp), lambda i: (0, 0), **resident_kw),    # Wu: resident
            pl.BlockSpec((Rp, I), lambda i: (0, 0), **resident_kw),    # Wv: resident
            pl.BlockSpec((1, I), lambda i: (0, 0), **resident_kw),     # b : resident
        ]
        return pl.pallas_call(
            kern,
            grid=(grid_m,),
            in_specs=in_specs,
            out_specs=pl.BlockSpec((tm, I), lambda i: (i, 0)),
            out_shape=jax.ShapeDtypeStruct((M_pad, I), out_dtype),
            compiler_params=pltpu.CompilerParams(
                dimension_semantics=("parallel",),
                vmem_limit_bytes=vmem_limit,
            ),
            cost_estimate=cost,
        )(x_c, wu_c, wv_c, b_c)

    try:
        out = _run(True)
    except Exception:
        # Fallback if pipeline_mode=pl.Buffered(1) is not supported in this JAX build.
        out = _run(False)

    return out[:M].reshape(*lead, I)


# ----------------------------------------------------------------------------
# Demo / self-check
# ----------------------------------------------------------------------------

if __name__ == "__main__":
    # Small config: batch=2, seq=12 (ragged -> exercises M padding + 2 grid steps),
    # hidden=256, svd_rank=32 (-> padded to 128), intermediate=512.
    B, S, H = 2, 12, 256
    RANK = 32
    INTER = 512

    root = jax.random.PRNGKey(0)
    k_x, k_u, k_v, k_b = jax.random.split(root, 4)

    hidden_states = jax.random.normal(k_x, (B, S, H), dtype=jnp.float32)
    wu = (0.02 * jax.random.normal(k_u, (H, RANK))).astype(jnp.float32)      # dense_u (no bias)
    wv = (0.02 * jax.random.normal(k_v, (RANK, INTER))).astype(jnp.float32)  # dense_v
    bv = (0.02 * jax.random.normal(k_b, (INTER,))).astype(jnp.float32)

    out = bert_intermediate_svd(hidden_states, wu, wv, bv, act="gelu")
    out = jax.block_until_ready(out)

    # Pure-JAX reference with matched bf16 operand rounding (f32 accumulation / math).
    cd = jnp.bfloat16
    x2d = hidden_states.reshape(-1, H).astype(cd)
    u_ref = jnp.dot(x2d, wu.astype(cd), preferred_element_type=jnp.float32)
    y_ref = jnp.dot(u_ref.astype(cd), wv.astype(cd),
                    preferred_element_type=jnp.float32) + bv
    y_ref = 0.5 * y_ref * (1.0 + jax.lax.erf(y_ref / math.sqrt(2.0)))
    y_ref = y_ref.astype(cd).astype(jnp.float32).reshape(B, S, INTER)

    assert out.shape == (B, S, INTER)
    assert out.dtype == cd
    diff = jnp.max(jnp.abs(out.astype(jnp.float32) - y_ref))
    assert diff <= 5e-3, f"mismatch vs reference: max |diff| = {diff}"
    print("KERNEL_OK")
</pallas_src>

<mosaic_0001>
module attributes {stable_mosaic.version = 11 : i64} {
  func.func @_svd_intermediate_kernel(%arg0: i32, %arg1: memref<16x256xbf16, #tpu.memory_space<vmem>>, %arg2: memref<256x128xbf16, #tpu.memory_space<vmem>>, %arg3: memref<128x512xbf16, #tpu.memory_space<vmem>>, %arg4: memref<1x512xf32, #tpu.memory_space<vmem>>, %arg5: memref<16x512xbf16, #tpu.memory_space<vmem>>) attributes {dimension_semantics = [#tpu.dimension_semantics<parallel>], iteration_bounds = array<i64: 2>, scalar_prefetch = 0 : i64, scratch_operands = 0 : i64, tpu.core_type = #tpu.core_type<tc>, window_params = [{transform_indices = @transform_0, window_bounds = array<i64: 16, 256>}, {pipeline_mode = #tpu.pipeline_mode<synchronous>, transform_indices = @transform_1, window_bounds = array<i64: 256, 128>}, {pipeline_mode = #tpu.pipeline_mode<synchronous>, transform_indices = @transform_2, window_bounds = array<i64: 128, 512>}, {pipeline_mode = #tpu.pipeline_mode<synchronous>, transform_indices = @transform_3, window_bounds = array<i64: 1, 512>}, {transform_indices = @transform_4, window_bounds = array<i64: 16, 512>}]} {
    %c0 = arith.constant 0 : index
    %c0_0 = arith.constant 0 : index
    %0 = vector.load %arg1[%c0, %c0_0] : memref<16x256xbf16, #tpu.memory_space<vmem>>, vector<16x256xbf16>
    %c0_1 = arith.constant 0 : index
    %c0_2 = arith.constant 0 : index
    %1 = vector.load %arg2[%c0_1, %c0_2] : memref<256x128xbf16, #tpu.memory_space<vmem>>, vector<256x128xbf16>
    %cst = arith.constant dense<0.000000e+00> : vector<16x128xf32>
    %2 = tpu.matmul %0, %1, %cst {dimension_numbers = #tpu.dot_dimension_numbers<[1], [0], [0], [1], [0, 0, 1, 1], [], []>} : vector<16x256xbf16>, vector<256x128xbf16>, vector<16x128xf32> -> vector<16x128xf32>
    %3 = arith.truncf %2 : vector<16x128xf32> to vector<16x128xbf16>
    %c0_3 = arith.constant 0 : index
    %c0_4 = arith.constant 0 : index
    %4 = vector.load %arg3[%c0_3, %c0_4] : memref<128x512xbf16, #tpu.memory_space<vmem>>, vector<128x512xbf16>
    %cst_5 = arith.constant dense<0.000000e+00> : vector<16x512xf32>
    %5 = tpu.matmul %3, %4, %cst_5 {dimension_numbers = #tpu.dot_dimension_numbers<[1], [0], [0], [1], [0, 0, 1, 1], [], []>} : vector<16x128xbf16>, vector<128x512xbf16>, vector<16x512xf32> -> vector<16x512xf32>
    %c0_6 = arith.constant 0 : index
    %c0_7 = arith.constant 0 : index
    %6 = vector.load %arg4[%c0_6, %c0_7] : memref<1x512xf32, #tpu.memory_space<vmem>>, vector<1x512xf32>
    %7 = vector.broadcast %6 : vector<1x512xf32> to vector<16x512xf32>
    %8 = arith.addf %5, %7 : vector<16x512xf32>
    %cst_8 = arith.constant 5.000000e-01 : f32
    %9 = vector.broadcast %cst_8 : f32 to vector<16x512xf32>
    %10 = arith.mulf %9, %8 : vector<16x512xf32>
    %cst_9 = arith.constant 0.707106769 : f32
    %11 = vector.broadcast %cst_9 : f32 to vector<16x512xf32>
    %12 = arith.mulf %8, %11 : vector<16x512xf32>
    %13 = math.erf %12 : vector<16x512xf32>
    %cst_10 = arith.constant 1.000000e+00 : f32
    %14 = vector.broadcast %cst_10 : f32 to vector<16x512xf32>
    %15 = arith.addf %14, %13 : vector<16x512xf32>
    %16 = arith.mulf %10, %15 : vector<16x512xf32>
    %17 = arith.truncf %16 : vector<16x512xf32> to vector<16x512xbf16>
    %c0_11 = arith.constant 0 : index
    %c0_12 = arith.constant 0 : index
    %18 = vector.load %arg5[%c0_11, %c0_12] : memref<16x512xbf16, #tpu.memory_space<vmem>>, vector<16x512xbf16>
    tpu.vector_store %arg5[%c0_11, %c0_12], %17 {strides = array<i32>} : memref<16x512xbf16, #tpu.memory_space<vmem>>, vector<16x512xbf16>,
    return
  }
  func.func @transform_0(%arg0: i32) -> (i32, i32) {
    %c0_i32 = arith.constant 0 : i32
    %c0_i32_0 = arith.constant 0 : i32
    return %arg0, %c0_i32 : i32, i32
  }
  func.func @transform_1(%arg0: i32) -> (i32, i32) {
    %c0_i32 = arith.constant 0 : i32
    %c0_i32_0 = arith.constant 0 : i32
    %c0_i32_1 = arith.constant 0 : i32
    return %c0_i32, %c0_i32_0 : i32, i32
  }
  func.func @transform_2(%arg0: i32) -> (i32, i32) {
    %c0_i32 = arith.constant 0 : i32
    %c0_i32_0 = arith.constant 0 : i32
    %c0_i32_1 = arith.constant 0 : i32
    return %c0_i32, %c0_i32_0 : i32, i32
  }
  func.func @transform_3(%arg0: i32) -> (i32, i32) {
    %c0_i32 = arith.constant 0 : i32
    %c0_i32_0 = arith.constant 0 : i32
    %c0_i32_1 = arith.constant 0 : i32
    return %c0_i32, %c0_i32_0 : i32, i32
  }
  func.func @transform_4(%arg0: i32) -> (i32, i32) {
    %c0_i32 = arith.constant 0 : i32
    %c0_i32_0 = arith.constant 0 : i32
    return %arg0, %c0_i32 : i32, i32
  }
}

module attributes {stable_mosaic.version = 11 : i64} {
  func.func @_svd_intermediate_kernel(%arg0: i32, %arg1: memref<16x256xbf16, #tpu.memory_space<vmem>>, %arg2: memref<256x128xbf16, #tpu.memory_space<vmem>>, %arg3: memref<128x512xbf16, #tpu.memory_space<vmem>>, %arg4: memref<1x512xf32, #tpu.memory_space<vmem>>, %arg5: memref<16x512xbf16, #tpu.memory_space<vmem>>) attributes {dimension_semantics = [#tpu.dimension_semantics<parallel>], iteration_bounds = array<i64: 2>, scalar_prefetch = 0 : i64, scratch_operands = 0 : i64, tpu.core_type = #tpu.core_type<tc>, window_params = [{transform_indices = @transform_0, window_bounds = array<i64: 16, 256>}, {pipeline_mode = #tpu.pipeline_mode<synchronous>, transform_indices = @transform_1, window_bounds = array<i64: 256, 128>}, {pipeline_mode = #tpu.pipeline_mode<synchronous>, transform_indices = @transform_2, window_bounds = array<i64: 128, 512>}, {pipeline_mode = #tpu.pipeline_mode<synchronous>, transform_indices = @transform_3, window_bounds = array<i64: 1, 512>}, {transform_indices = @transform_4, window_bounds = array<i64: 16, 512>}]} {
    %c0 = arith.constant 0 : index
    %c0_0 = arith.constant 0 : index
    %0 = vector.load %arg1[%c0, %c0_0] : memref<16x256xbf16, #tpu.memory_space<vmem>>, vector<16x256xbf16>
    %c0_1 = arith.constant 0 : index
    %c0_2 = arith.constant 0 : index
    %1 = vector.load %arg2[%c0_1, %c0_2] : memref<256x128xbf16, #tpu.memory_space<vmem>>, vector<256x128xbf16>
    %cst = arith.constant dense<0.000000e+00> : vector<16x128xf32>
    %2 = tpu.matmul %0, %1, %cst {dimension_numbers = #tpu.dot_dimension_numbers<[1], [0], [0], [1], [0, 0, 1, 1], [], []>} : vector<16x256xbf16>, vector<256x128xbf16>, vector<16x128xf32> -> vector<16x128xf32>
    %3 = arith.truncf %2 : vector<16x128xf32> to vector<16x128xbf16>
    %c0_3 = arith.constant 0 : index
    %c0_4 = arith.constant 0 : index
    %4 = vector.load %arg3[%c0_3, %c0_4] : memref<128x512xbf16, #tpu.memory_space<vmem>>, vector<128x512xbf16>
    %cst_5 = arith.constant dense<0.000000e+00> : vector<16x512xf32>
    %5 = tpu.matmul %3, %4, %cst_5 {dimension_numbers = #tpu.dot_dimension_numbers<[1], [0], [0], [1], [0, 0, 1, 1], [], []>} : vector<16x128xbf16>, vector<128x512xbf16>, vector<16x512xf32> -> vector<16x512xf32>
    %c0_6 = arith.constant 0 : index
    %c0_7 = arith.constant 0 : index
    %6 = vector.load %arg4[%c0_6, %c0_7] : memref<1x512xf32, #tpu.memory_space<vmem>>, vector<1x512xf32>
    %7 = vector.broadcast %6 : vector<1x512xf32> to vector<16x512xf32>
    %8 = arith.addf %5, %7 : vector<16x512xf32>
    %cst_8 = arith.constant 5.000000e-01 : f32
    %9 = vector.broadcast %cst_8 : f32 to vector<16x512xf32>
    %10 = arith.mulf %9, %8 : vector<16x512xf32>
    %cst_9 = arith.constant 0.707106769 : f32
    %11 = vector.broadcast %cst_9 : f32 to vector<16x512xf32>
    %12 = arith.mulf %8, %11 : vector<16x512xf32>
    %13 = math.erf %12 : vector<16x512xf32>
    %cst_10 = arith.constant 1.000000e+00 : f32
    %14 = vector.broadcast %cst_10 : f32 to vector<16x512xf32>
    %15 = arith.addf %14, %13 : vector<16x512xf32>
    %16 = arith.mulf %10, %15 : vector<16x512xf32>
    %17 = arith.truncf %16 : vector<16x512xf32> to vector<16x512xbf16>
    %c0_11 = arith.constant 0 : index
    %c0_12 = arith.constant 0 : index
    %18 = vector.load %arg5[%c0_11, %c0_12] : memref<16x512xbf16, #tpu.memory_space<vmem>>, vector<16x512xbf16>
    tpu.vector_store %arg5[%c0_11, %c0_12], %17 {strides = array<i32>} : memref<16x512xbf16, #tpu.memory_space<vmem>>, vector<16x512xbf16>,
    return
  }
  func.func @transform_0(%arg0: i32) -> (i32, i32) {
    %c0_i32 = arith.constant 0 : i32
    %c0_i32_0 = arith.constant 0 : i32
    return %arg0, %c0_i32 : i32, i32
  }
  func.func @transform_1(%arg0: i32) -> (i32, i32) {
    %c0_i32 = arith.constant 0 : i32
    %c0_i32_0 = arith.constant 0 : i32
    %c0_i32_1 = arith.constant 0 : i32
    return %c0_i32, %c0_i32_0 : i32, i32
  }
  func.func @transform_2(%arg0: i32) -> (i32, i32) {
    %c0_i32 = arith.constant 0 : i32
    %c0_i32_0 = arith.constant 0 : i32
    %c0_i32_1 = arith.constant 0 : i32
    return %c0_i32, %c0_i32_0 : i32, i32
  }
  func.func @transform_3(%arg0: i32) -> (i32, i32) {
    %c0_i32 = arith.constant 0 : i32
    %c0_i32_0 = arith.constant 0 : i32
    %c0_i32_1 = arith.constant 0 : i32
    return %c0_i32, %c0_i32_0 : i32, i32
  }
  func.func @transform_4(%arg0: i32) -> (i32, i32) {
    %c0_i32 = arith.constant 0 : i32
    %c0_i32_0 = arith.constant 0 : i32
    return %arg0, %c0_i32 : i32, i32
  }
}

</mosaic_0001>

<bundles_post_ra>
// kernel: tpu_custom_call.1
= control target key start
LH: loop header
LB: loop body
LE: loop exit
PB: predicated region body
PF: predicated region fallthrough
CT: control target
= control target key end

     0   :  { %9 = vsyncpa [#allocation3], 0  ;;  %s1553_s0 = inlined_call_operand.hbm [shape: bf16[32,256], index: 0, kind: input, shape index: {}]   ;;  %s1554_s1 = inlined_call_operand.hbm [shape: bf16[256,128], index: 1, kind: input, shape index: {}]   ;;  %s1555_s2 = inlined_call_operand.hbm [shape: bf16[128,512], index: 2, kind: input, shape index: {}]   ;;  %s1556_s3 = inlined_call_operand.vmem [shape: f32[1,512], index: 3, kind: input, shape index: {}]   ;;  %s1557_s4 = inlined_call_operand.hbm [shape: bf16[32,512], index: 4, kind: output, shape index: {}]  }
   0x1   :  { %11 = vsyncpa [#allocation3 + $0x1], 0 }
   0x2   :  { %12 = vsyncpa [#allocation6], 0 }
   0x3   :  { %13 = vsyncpa [#allocation4], 0 }
   0x4   :  { %15 = vsyncpa [#allocation4 + $0x1], 0  ;;  %s1357_s15 = smov 0   ;;  %s1359_s16 = smov 0  }
   0x5   :  { %s1361_s17 = smov 0   ;;  %s1363_s18 = smov 0  }
   0x6 LB: > { %s1378_s19 = sadd.s32 4294967295, %s1317_s18   ;;  %s906_s20 = sadd.s32 4294967294, %s1317_s18   ;;  %s1317_s18 = sphi %s1363_s18, %s1579_s18   ;;  %s1313_s17 = sphi %s1361_s17, %s1578_s17   ;;  %s1309_s16 = sphi %s1359_s16, %s1577_s16   ;;  %s1305_s15 = sphi %s1357_s15, %s1576_s15  }
   0x7   : > { %p41_p0 = scmp.ne.s32.totalorder %s1309_s16, %s1305_s15  ;;  %p1558_p1 = scmp.eq.s32.totalorder %s1378_s19, 0 }
   0x8   : > { %p134_p3 = scmp.eq.s32.totalorder %s906_s20, 1  ;;  %p907_p5 = scmp.ge.s32.totalorder %s1317_s18, 1 }
   0x9   : > { %p1387_p4 = por %p1558_p1, %p41_p0  ;;  %p141_p7 = scmp.lt.s32.totalorder %s1317_s18, 3 }
   0xa   : > { %p1392_p6 = por %p134_p3, %p41_p0  ;;  %s1319_s24 = smov [#allocation5]  }
   0xb   : > { %s1562_s21 = scalar_select %p1387_p4, 1, 0 }
   0xc   : > { %s1563_s22 = scalar_select %p1392_p6, 1, 0 }
   0xd   : > { %p1397_p8 = pnand %p907_p5, %p141_p7  ;;  %s153_s25 = sshll.u32 %s1319_s24, 4  ;;  %s154_s25 = int_to_ptr.vmem [resolvable:$true] %s153_s25 }
   0xe   : > { %s1320_s27 = smov [#allocation7]   ;;  %s1180_s29 = scalar_lea.vmem %s154_s25, 2048 }
   0xf   : > { %s1564_s23 = scalar_select %p1397_p8, 1, 0 }
  0x10   : > { %p1022_p9 = pneg %p1397_p8  ;;  %s166_s28 = sshll.u32 %s1320_s27, 4  ;;  %s167_s28 = int_to_ptr.vmem [resolvable:$true] %s166_s28 }
  0x11   : > { %p1181_p13 = scmp.ne.s32.totalorder %s154_s25, %s1180_s29  ;;  %p1188_p5 = scmp.lt.s32.totalorder %s154_s25, %s154_s25 }
  0x12   : > { %p1406_p11 = pnand %p1022_p9, %p1558_p1  ;;  %p1189_p7 = scmp.lt.s32.totalorder %s1180_s29, %s1180_s29 }
  0x14   : > { %p1171_p12 = pneg %p1406_p11  ;;  %p1190_p10 = por %p1189_p7, %p1188_p5 }
  0x16   : > { %p1183_p0 = pnand %p1181_p13, %p1171_p12 }
  0x18   : > { %p1184_p3 = pneg %p1183_p0 }
  0x1a   : > { %p1191_p9 = pnand %p1190_p10, %p1184_p3 }
  0x1c   : > { %1194 = shalt.err (!%p1191_p9)
}
  0x1d   : > { %s1321_s30 = smov 64   ;;  %s1322_s5 = smov 4  }
  0x1e   : > { %1025 = dma.hbm_to_vmem [thread:$0]  (!%p1406_p11), %s1554_s1, 2048, %s154_s25, [#allocation6], %s1321_s30, %s1321_s30, %s1322_s5  }
  0x1f   : > { %s1206_s8 = scalar_lea.vmem %s167_s28, 4096  ;;  %p1214_p2 = scmp.lt.s32.totalorder %s167_s28, %s167_s28 }
  0x20   : > { %p1207_p1 = scmp.ne.s32.totalorder %s167_s28, %s1206_s8  ;;  %p1215_p6 = scmp.lt.s32.totalorder %s1206_s8, %s1206_s8 }
  0x22   : > { %p1209_p13 = pnand %p1207_p1, %p1171_p12  ;;  %p1216_p5 = por %p1215_p6, %p1214_p2 }
  0x24   : > { %p1210_p0 = pneg %p1209_p13 }
  0x26   : > { %p1217_p10 = pnand %p1216_p5, %p1210_p0 }
  0x28   : > { %1220 = shalt.err (!%p1217_p10)
}
  0x29   : > { %s1323_s9 = smov 256   ;;  %s1324_s10 = smov 16  }
  0x2a   : > { %1028 = dma.hbm_to_vmem [thread:$0]  (!%p1406_p11), %s1555_s2, 4096, %s167_s28, [#allocation6], %s1323_s9, %s1323_s9, %s1324_s10  }
  0x2b   : > { %s1429_s13 = sadd.s32 1, %s1317_s18   ;;  %s28_s20 = sadd.s32 1, %s1313_s17 }
  0x2c   : > { %s25_s14 = ssub.s32 %s1317_s18, %s1429_s13  ;;  %p35_p2 = scmp.ne.s32.totalorder %s1313_s17, %s1309_s16 }
  0x2d   : > { %p26_p1 = scmp.eq.s32.totalorder %s25_s14, 0  ;;  %p36_p6 = scmp.eq.s32.totalorder %s1317_s18, 0 }
  0x2e   : > { %p1566_p3 = scmp.eq.s32.totalorder %s1378_s19, 1  ;;  %p1039_p9 = scmp.lt.s32.totalorder %s1317_s18, 2 }
  0x2f   : > { %s1438_s24 = scalar_select %p26_p1, %s1313_s17, %s28_s20  }
  0x30   : > { %p37_p12 = por %p36_p6, %p35_p2  ;;  %p1442_p7 = por %p1566_p3, %p35_p2 }
  0x31   : > { %s183_s26 = sand.u32 1, %s1313_s17   ;;  %s981_s28 = sshll.u32 %s1317_s18, 8 }
  0x32   : > { %s1567_s25 = scalar_select %p1442_p7, 1, 0 }
  0x33   : > { %s911_s27 = sshll.u32 %s183_s26, 4  ;;  %s1452_s5 = scalar_lea.hbm %s1553_s0, %s981_s28 }
  0x34   : > { %s187_s6 = scalar_lea.vmem [#allocation2], %s911_s27  ;;  %p1456_p11 = pnand %p1039_p9, %p37_p12 }
  0x35   : > { %s195_s7 = sshll.u32 %s187_s6, 4  ;;  %s1460_s9 = scalar_lea.sflag [#allocation3], %s183_s26  ;;  %s1454_s7 = int_to_ptr.vmem [resolvable:$true] %s195_s7 }
  0x36   : > { %s1221_s10 = scalar_lea.hbm %s1452_s5, 256  ;;  %p1223_p0 = pneg %p1456_p11 }
  0x37   : > { %p1222_p13 = scmp.ne.s32.totalorder %s1452_s5, %s1221_s10  ;;  %s1226_s14 = scalar_lea.hbm %s1553_s0, 512 }
  0x38   : > { %p1227_p1 = scmp.lt.s32.totalorder %s1452_s5, %s1553_s0  ;;  %p1228_p2 = scmp.lt.s32.totalorder %s1226_s14, %s1221_s10 }
  0x39   : > { %p1224_p5 = pnand %p1223_p0, %p1222_p13 }
  0x3a   : > { %p1229_p6 = por %p1228_p2, %p1227_p1 }
  0x3b   : > { %p1225_p10 = pneg %p1224_p5 }
  0x3d   : > { %p1230_p12 = pnand %p1229_p6, %p1225_p10 }
  0x3f   : > { %1233 = shalt.err (!%p1230_p12)
}
  0x40   : > { %s1234_s26 = scalar_lea.vmem %s1454_s7, 256  ;;  %s1325_s28 = smov [#allocation2]  }
  0x41   : > { %p1235_p3 = scmp.ne.s32.totalorder %s1454_s7, %s1234_s26  ;;  %s1239_s29 = sshll.u32 %s1325_s28, 4  ;;  %s1240_s29 = int_to_ptr.vmem [resolvable:$false] %s1239_s29 }
  0x42   : > { %s1241_s30 = scalar_lea.vmem %s1240_s29, 512  ;;  %p1242_p5 = scmp.lt.s32.totalorder %s1454_s7, %s1240_s29 }
  0x43   : > { %p1237_p9 = pnand %p1235_p3, %p1223_p0  ;;  %p1243_p7 = scmp.lt.s32.totalorder %s1241_s30, %s1234_s26 }
  0x45   : > { %p1238_p13 = pneg %p1237_p9  ;;  %p1244_p4 = por %p1243_p7, %p1242_p5 }
  0x47   : > { %p1245_p8 = pnand %p1244_p4, %p1238_p13 }
  0x49   : > { %1248 = shalt.err (!%p1245_p8)
}
  0x4a   : > { %s1326_s6 = smov 128   ;;  %s1327_s10 = smov 8  }
  0x4b   : > { %1032 = dma.hbm_to_vmem [thread:$0]  (!%p1456_p11), %s1452_s5, 256, %s1454_s7, %s1460_s9, %s1326_s6, %s1326_s6, %s1327_s10  }
  0x4c   : > { %p1569_p0 = scmp.ne.s32.totalorder %s1564_s23, 0 }
  0x4d   : > { %s1484_s11 = sand.u32 (!%p1569_p0), 1, %s1309_s16   ;;  %p1570_p4 = scmp.ne.s32.totalorder (!%p1569_p0), %s1562_s21, 0 }
  0x4e   : > { %207 = sbr.rel (%p1569_p0) target bundleno = 561 (0x231), region = 36  ;;  %s916_s12 = sshll.u32 (!%p1569_p0), %s1484_s11, 4 }
  0x4f   : > { %s210_s14 = scalar_lea.sflag (!%p1569_p0), [#allocation3], %s1484_s11  ;;  %s1488_s20 = scalar_lea.vmem (!%p1569_p0), [#allocation2], %s916_s12 }
  0x53   : > { %1292 = dma.done.wait (%p1570_p4), %s210_s14, 256  }
  0x54   : > { %1294 = vsyncadd (%p1570_p4), %s210_s14, 4294967040  ;;  %p1571_p8 = scmp.eq.s32.totalorder %s1378_s19, 0 }
  0x56   : > { %1296 = dma.done.wait (%p1571_p8), [#allocation6], 6144   ;;  %p1572_p7 = pmov %p1571_p8 }
  0x57   : > { %v1086_v0 = vld [vmem:[#allocation5 + $0x78] sm:$0xff]   ;;  %v1088_v2 = vld [vmem:[#allocation5 + $0x70] sm:$0xff]   ;;  %v1090_v4 = vld [vmem:[#allocation5 + $0x68] sm:$0xff]   ;;  %v1328_v50 = vmov 0   ;;  %v465_v58 = vlaneseq  ;;  %s919_s5 = sshll.u32 %s1484_s11, 5  ;;  %s987_s9 = sshll.u32 %s1378_s19, 9 }
  0x58   : > { %1298 = vsyncadd (%p1572_p7), [#allocation6], 4294961152  ;;  %v1087_v1 = vld [vmem:[#allocation5 + $0x38] sm:$0xff]   ;;  %988 = vmatprep.subr.bf16.mxu0 %v1086_v0  ;;  %v1089_v3 = vld [vmem:[#allocation5 + $0x30] sm:$0xff]   ;;  %677 = vmatprep.mubr.bf16.mxu1 %v1328_v50  ;;  %s245_s7 = scalar_lea.vmem [#allocation8], %s919_s5  ;;  %s1510_s28 = scalar_lea.hbm %s1557_s4, %s987_s9 }
  0x59   : > { %989 = vmatpush3.bf16.msra.mxu0 %v1087_v1  ;;  %v1091_v5 = vld [vmem:[#allocation5 + $0x28] sm:$0xff]   ;;  %v1092_v6 = vld [vmem:[#allocation5 + $0x60] sm:$0xff]   ;;  %v1094_v8 = vld [vmem:[#allocation5 + $0x58] sm:$0xff]   ;;  %v466_v59 = vshrl.u32 %v465_v58, 7  ;;  %s814_s8 = sshll.u32 %s245_s7, 4  ;;  %s800_s19 = scalar_lea.sflag [#allocation4], %s1484_s11  ;;  %s1505_s8 = int_to_ptr.vmem [resolvable:$true] %s814_s8 }
  0x5a   : > { %990 = vmatprep.subr.bf16.mxu0 %v1088_v2  ;;  %v1093_v7 = vld [vmem:[#allocation5 + $0x20] sm:$0xff]   ;;  %v1095_v9 = vld [vmem:[#allocation5 + $0x18] sm:$0xff]   ;;  %v1096_v10 = vld [vmem:[#allocation5 + $0x50] sm:$0xff]   ;;  %s1249_s29 = scalar_lea.vmem %s1505_s8, 512  ;;  %p1573_p10 = scmp.ne.s32.totalorder %s1567_s25, 0 }
  0x5b   : > { %v1104_v11 = vld [vmem:[%s1488_s20 + $0x4] ss:$8 sps:$4 sm:$0xff]   ;;  %v1110_v15 = vld [vmem:[#allocation7 + $0xe0] ss:$16 sps:$4 sm:$0xff]   ;;  %v1107_v27 = vld [vmem:[#allocation7 + $0xe8] ss:$16 sps:$4 sm:$0xff]   ;;  %p1250_p11 = scmp.ne.s32.totalorder %s1505_s8, %s1249_s29 }
  0x5c   : > { %v1105_v12 = vld [vmem:[#allocation7 + $0xe4] ss:$16 sps:$4 sm:$0xff]   ;;  %v1098_v14 = vld [vmem:[#allocation5 + $0x48] sm:$0xff]   ;;  %421 = vmatprep.mubr.bf16.mxu0 %v1104_v11  ;;  %v1116_v18 = vld [vmem:[#allocation7 + $0xc0] ss:$16 sps:$4 sm:$0xff]   ;;  %v467_v60 = vsub.s32 0, %v466_v59 }
  0x5d   : > { %991 = vmatpush3.bf16.msra.mxu0 %v1089_v3  ;;  %v1097_v13 = vld [vmem:[#allocation5 + $0x10] sm:$0xff]   ;;  %645 = vmatprep.subr.bf16.mxu1 %v1105_v12  ;;  %v1099_v17 = vld [vmem:[#allocation5 + $0x8] sm:$0xff]   ;;  %v1100_v20 = vld [vmem:[#allocation5 + $0x40] sm:$0xff]   ;;  %v475_v61 = vsub.s32 2, %v466_v59  ;;  %v471_v63 = vsub.s32 1, %v466_v59  ;;  %v479_v0 = vsub.s32 3, %v466_v59  ;;  %p1251_p1 = pnand %p1250_p11, %p1573_p10 }
  0x5e   : > { %992 = vmatprep.subr.bf16.mxu0 %v1090_v4  ;;  %v1111_v16 = vld [vmem:[#allocation7 + $0xc4] ss:$16 sps:$4 sm:$0xff]   ;;  %646 = vmatpush1.bf16.msra.mxu1 %v1110_v15  ;;  %v1122_v21 = vld [vmem:[#allocation7 + $0xa0] ss:$16 sps:$4 sm:$0xff]   ;;  %v1109_v25 = vld [vmem:[#allocation7 + $0xec] ss:$16 sps:$4 sm:$0xff]  }
  0x5f   : > { %647 = vmatprep.subr.bf16.mxu1 %v1111_v16  ;;  %v1117_v19 = vld [vmem:[#allocation7 + $0xa4] ss:$16 sps:$4 sm:$0xff]   ;;  %v1102_v24 = vld [vmem:[%s1488_s20] ss:$8 sps:$4 sm:$0xff]   ;;  %v1115_v29 = vld [vmem:[#allocation7 + $0xcc] ss:$16 sps:$4 sm:$0xff]   ;;  %p1252_p2 = pneg %p1251_p1 }
  0x60   : > { %v1123_v22 = vld [vmem:[#allocation7 + $0x84] ss:$16 sps:$4 sm:$0xff]   ;;  %v1128_v26 = vld [vmem:[#allocation7 + $0x80] ss:$16 sps:$4 sm:$0xff]   ;;  %v1113_v32 = vld [vmem:[#allocation7 + $0xc8] ss:$16 sps:$4 sm:$0xff]  }
  0x61   : > { %993 = vmatpush3.bf16.msra.mxu0 %v1091_v5  ;;  %v1101_v23 = vld [vmem:[#allocation5] sm:$0xff]   ;;  %v1121_v33 = vld [vmem:[#allocation7 + $0xac] ss:$16 sps:$4 sm:$0xff]   ;;  %v1119_v34 = vld [vmem:[#allocation7 + $0xa8] ss:$16 sps:$4 sm:$0xff]   ;;  %s1329_s30 = smov [#allocation8]  }
  0x62   : > { %994 = vmatprep.subr.bf16.mxu0 %v1092_v6  ;;  %648 = vmatpush1.bf16.msra.mxu1 %v1116_v18  ;;  %v1129_v28 = vld [vmem:[#allocation7 + $0x64] ss:$16 sps:$4 sm:$0xff]   ;;  %v1134_v30 = vld [vmem:[#allocation7 + $0x60] ss:$16 sps:$4 sm:$0xff]   ;;  %v1127_v35 = vld [vmem:[#allocation7 + $0x8c] ss:$16 sps:$4 sm:$0xff]  }
  0x63   : > { %649 = vmatprep.subr.bf16.mxu1 %v1117_v19  ;;  %v1135_v31 = vld [vmem:[#allocation7 + $0x44] ss:$16 sps:$4 sm:$0xff]   ;;  %v1125_v36 = vld [vmem:[#allocation7 + $0x88] ss:$16 sps:$4 sm:$0xff]   ;;  %v1133_v37 = vld [vmem:[#allocation7 + $0x6c] ss:$16 sps:$4 sm:$0xff]  }
  0x64   : > { %v1131_v38 = vld [vmem:[#allocation7 + $0x68] ss:$16 sps:$4 sm:$0xff]   ;;  %v1139_v39 = vld [vmem:[#allocation7 + $0x4c] ss:$16 sps:$4 sm:$0xff]   ;;  %v1140_v41 = vld [vmem:[#allocation7 + $0x40] ss:$16 sps:$4 sm:$0xff]  }
  0x65   : > { %995 = vmatpush3.bf16.msra.mxu0 %v1093_v7  ;;  %v1137_v40 = vld [vmem:[#allocation7 + $0x48] ss:$16 sps:$4 sm:$0xff]   ;;  %v1141_v42 = vld [vmem:[#allocation7 + $0x24] ss:$16 sps:$4 sm:$0xff]   ;;  %v1145_v43 = vld [vmem:[#allocation7 + $0x2c] ss:$16 sps:$4 sm:$0xff]  }
  0x66   : > { %996 = vmatprep.subr.bf16.mxu0 %v1094_v8  ;;  %650 = vmatpush1.bf16.msra.mxu1 %v1122_v21  ;;  %v1143_v44 = vld [vmem:[#allocation7 + $0x28] ss:$16 sps:$4 sm:$0xff]   ;;  %v1146_v45 = vld [vmem:[#allocation7 + $0x20] ss:$16 sps:$4 sm:$0xff]   ;;  %v1147_v46 = vld [vmem:[#allocation7 + $0x4] ss:$16 sps:$4 sm:$0xff]  }
  0x67   : > { %651 = vmatprep.subr.bf16.mxu1 %v1123_v22  ;;  %v1151_v47 = vld [vmem:[#allocation7 + $0xc] ss:$16 sps:$4 sm:$0xff]   ;;  %v1149_v48 = vld [vmem:[#allocation7 + $0x8] ss:$16 sps:$4 sm:$0xff]   ;;  %v1152_v49 = vld [vmem:[#allocation7] ss:$16 sps:$4 sm:$0xff]  }
  0x68   : > { %v463_v62 = vld [vmem:[%s1556_s3] sm:$0xf]  ;;  %s1253_s6 = sshll.u32 %s1329_s30, 4  ;;  %s1254_s6 = int_to_ptr.vmem [resolvable:$false] %s1253_s6 }
  0x69   : > { %997 = vmatpush3.bf16.msra.mxu0 %v1095_v9  ;;  %v468_v1 = vrot.slane %v463_v62, %v467_v60  ;;  %v476_v2 = vrot.slane %v463_v62, %v475_v61  ;;  %v472_v5 = vrot.slane %v463_v62, %v471_v63  ;;  %v480_v6 = vrot.slane %v463_v62, %v479_v0  ;;  %s1255_s10 = scalar_lea.vmem %s1254_s6, 1024  ;;  %p1256_p6 = scmp.lt.s32.totalorder %s1505_s8, %s1254_s6 }
  0x6a   : > { %998 = vmatprep.subr.bf16.mxu0 %v1096_v10  ;;  %652 = vmatpush1.bf16.msra.mxu1 %v1128_v26  ;;  %p1257_p12 = scmp.lt.s32.totalorder %s1255_s10, %s1249_s29 }
  0x6b   : > { %653 = vmatprep.subr.bf16.mxu1 %v1129_v28 }
  0x6c   : > { %p1258_p3 = por %p1257_p12, %p1256_p6 }
  0x6d   : > { %999 = vmatpush3.bf16.msra.mxu0 %v1097_v13 }
  0x6e   : > { %1000 = vmatprep.subr.bf16.mxu0 %v1098_v14  ;;  %654 = vmatpush1.bf16.msra.mxu1 %v1134_v30  ;;  %p1259_p9 = pnand %p1258_p3, %p1252_p2 }
  0x6f   : > { %655 = vmatprep.subr.bf16.mxu1 %v1135_v31 }
  0x71   : > { %1001 = vmatpush3.bf16.msra.mxu0 %v1099_v17 }
  0x72   : > { %1002 = vmatprep.subr.bf16.mxu0 %v1100_v20  ;;  %656 = vmatpush1.bf16.msra.mxu1 %v1140_v41 }
  0x73   : > { %657 = vmatprep.subr.bf16.mxu1 %v1141_v42 }
  0x75   : > { %1003 = vmatpush3.bf16.msra.mxu0 %v1101_v23 }
  0x76   : > { %688 = vmatprep.subr.bf16.mxu0 %v1109_v25  ;;  %658 = vmatpush1.bf16.msra.mxu1 %v1146_v45 }
  0x77   : > { %659 = vmatprep.subr.bf16.mxu1 %v1147_v46 }
  0x78   : > { %422 = vmatmul.mubr.bf16.vlgmr.msra.gmra.mxu0 %v1102_v24 }
  0x79   : > { %689 = vmatpush1.bf16.msra.mxu0 %v1107_v27  ;;  %720 = vmatprep.mubr.bf16.mxu0 %v1328_v50 }
  0x7a   : > { %690 = vmatprep.subr.bf16.mxu0 %v1115_v29  ;;  %660 = vmatpush1.bf16.msra.mxu1 %v1152_v49 }
  0x7d   : > { %691 = vmatpush1.bf16.msra.mxu0 %v1113_v32 }
  0x7e   : > { %692 = vmatprep.subr.bf16.mxu0 %v1121_v33 }
  0x81   : > { %693 = vmatpush1.bf16.msra.mxu0 %v1119_v34 }
  0x82   : > { %694 = vmatprep.subr.bf16.mxu0 %v1127_v35 }
  0x85   : > { %695 = vmatpush1.bf16.msra.mxu0 %v1125_v36 }
  0x86   : > { %696 = vmatprep.subr.bf16.mxu0 %v1133_v37 }
  0x89   : > { %697 = vmatpush1.bf16.msra.mxu0 %v1131_v38 }
  0x8a   : > { %698 = vmatprep.subr.bf16.mxu0 %v1139_v39 }
  0x8d   : > { %699 = vmatpush1.bf16.msra.mxu0 %v1137_v40 }
  0x8e   : > { %700 = vmatprep.subr.bf16.mxu0 %v1145_v43 }
  0x91   : > { %701 = vmatpush1.bf16.msra.mxu0 %v1143_v44 }
  0x92   : > { %702 = vmatprep.subr.bf16.mxu0 %v1151_v47 }
  0x95   : > { %703 = vmatpush1.bf16.msra.mxu0 %v1149_v48 }
 0x138   : > { %v1004_v51 = vpop.f32.mrf.mxu0 }
 0x13a   : > { %v1005_v52 = vpop.f32.mrf.mxu0 }
 0x13b   : > { %v1006_v55 = vadd.f32 %v1005_v52, %v1004_v51 }
 0x13c   : > { %v1007_v53 = vpop.f32.mrf.mxu0 }
 0x13e   : > { %v1008_v54 = vpop.f32.mrf.mxu0 }
 0x13f   : > { %v1009_v56 = vadd.f32 %v1008_v54, %v1007_v53 }
 0x141   : > { %v430_v57 = vpack.c.bf16 %v1009_v56, %v1006_v55 }
 0x143   : > { %678 = vmatmul.mubr.bf16.vlgmr.msra.gmra.mxu1 %v430_v57  ;;  %721 = vmatmul.mubr.bf16.vlgmr.msra.gmra.mxu0 %v430_v57 }
 0x203   : > { %v679_v3 = vpop.f32.mrf.mxu1  ;;  %v722_v4 = vpop.f32.mrf.mxu0 }
 0x204   : > { %v680_v7 = vadd.f32 %v679_v3, %v468_v1  ;;  %v723_v8 = vadd.f32 %v722_v4, %v476_v2 }
 0x205   : > { %v681_v9 = vpop.f32.mrf.mxu1  ;;  %v724_v10 = vpop.f32.mrf.mxu0 }
 0x206   : > { %v739_v11 = vmul.f32 0.70710677, %v680_v7  ;;  %v741_v12 = vmul.f32 0.70710677, %v723_v8  ;;  %v682_v13 = vadd.f32 %v681_v9, %v472_v5  ;;  %v725_v14 = vadd.f32 %v724_v10, %v480_v6 }
 0x207   : > { %v683_v15 = vpop.f32.mrf.mxu1  ;;  %v726_v16 = vpop.f32.mrf.mxu0  ;;  %v731_v35 = vmul.f32 0.5, %v680_v7  ;;  %v733_v39 = vmul.f32 0.5, %v723_v8 }
 0x208   : > { %1153 = verf.f32 %v739_v11  ;;  %v684_v17 = vadd.f32 %v683_v15, %v468_v1  ;;  %v727_v18 = vadd.f32 %v726_v16, %v476_v2  ;;  %v740_v19 = vmul.f32 0.70710677, %v682_v13 }
 0x209   : > { %1155 = verf.f32 %v741_v12  ;;  %v685_v20 = vpop.f32.mrf.mxu1  ;;  %v728_v21 = vpop.f32.mrf.mxu0  ;;  %v742_v22 = vmul.f32 0.70710677, %v725_v14  ;;  %v732_v36 = vmul.f32 0.5, %v682_v13  ;;  %v734_v40 = vmul.f32 0.5, %v725_v14 }
 0x20a   : > { %v743_v23 = vmul.f32 0.70710677, %v684_v17  ;;  %1157 = verf.f32 %v740_v19  ;;  %v745_v24 = vmul.f32 0.70710677, %v727_v18  ;;  %v686_v25 = vadd.f32 %v685_v20, %v472_v5 }
 0x20b   : > { %v729_v26 = vadd.f32 %v728_v21, %v480_v6  ;;  %1159 = verf.f32 %v742_v22  ;;  %v735_v52 = vmul.f32 0.5, %v684_v17  ;;  %v737_v56 = vmul.f32 0.5, %v727_v18 }
 0x20c   : > { %1161 = verf.f32 %v743_v23  ;;  %v744_v27 = vmul.f32 0.70710677, %v686_v25  ;;  %v736_v53 = vmul.f32 0.5, %v686_v25 }
 0x20d   : > { %1163 = verf.f32 %v745_v24  ;;  %v746_v28 = vmul.f32 0.70710677, %v729_v26  ;;  %v738_v57 = vmul.f32 0.5, %v729_v26 }
 0x20e   : > { %1165 = verf.f32 %v744_v27 }
 0x20f   : > { %1167 = verf.f32 %v746_v28 }
 0x215   : > { %v1154_v29 = vpop.eup %1153 }
 0x216   : > { %v1156_v30 = vpop.eup %1155  ;;  %v755_v31 = vadd.f32 1.0, %v1154_v29 }
 0x217   : > { %v1158_v32 = vpop.eup %1157  ;;  %v757_v33 = vadd.f32 1.0, %v1156_v30 }
 0x218   : > { %v1160_v34 = vpop.eup %1159  ;;  %v756_v37 = vadd.f32 1.0, %v1158_v32  ;;  %v763_v43 = vmul.f32 %v755_v31, %v731_v35 }
 0x219   : > { %v1162_v38 = vpop.eup %1161  ;;  %v758_v41 = vadd.f32 1.0, %v1160_v34  ;;  %v765_v47 = vmul.f32 %v757_v33, %v733_v39 }
 0x21a   : > { %v1164_v42 = vpop.eup %1163  ;;  %v764_v44 = vmul.f32 %v756_v37, %v732_v36  ;;  %v759_v45 = vadd.f32 1.0, %v1162_v38 }
 0x21b   : > { %v1166_v46 = vpop.eup %1165  ;;  %v766_v48 = vmul.f32 %v758_v41, %v734_v40  ;;  %v761_v49 = vadd.f32 1.0, %v1164_v42 }
 0x21c   : > { %v1168_v50 = vpop.eup %1167  ;;  %v982_v51 = vpack.c.bf16 %v764_v44, %v763_v43  ;;  %v760_v54 = vadd.f32 1.0, %v1166_v46  ;;  %v767_v59 = vmul.f32 %v759_v45, %v735_v52 }
 0x21d   : > { %v983_v55 = vpack.c.bf16 %v766_v48, %v765_v47  ;;  %v762_v58 = vadd.f32 1.0, %v1168_v50  ;;  %v769_v61 = vmul.f32 %v761_v49, %v737_v56 }
 0x21e   : > { %795 = vst [vmem:[%s245_s7] sm:$0xff] %v982_v51  ;;  %v768_v60 = vmul.f32 %v760_v54, %v736_v53 }
 0x21f   : > { %796 = vst [vmem:[%s245_s7 + $0x8] sm:$0xff] %v983_v55  ;;  %v770_v62 = vmul.f32 %v762_v58, %v738_v57 }
 0x220   : > { %v984_v63 = vpack.c.bf16 %v768_v60, %v767_v59 }
 0x221   : > { %v985_v0 = vpack.c.bf16 %v770_v62, %v769_v61 }
 0x222   : > { %797 = vst [vmem:[%s245_s7 + $0x10] sm:$0xff] %v984_v63 }
 0x223   : > { %798 = vst [vmem:[%s245_s7 + $0x18] sm:$0xff] %v985_v0 }
 0x224   : > { %1262 = shalt.err (!%p1259_p9)
}
 0x225   : > { %s1263_s12 = scalar_lea.hbm %s1510_s28, 512  ;;  %s1267_s21 = scalar_lea.hbm %s1557_s4, 1024 }
 0x226   : > { %p1264_p13 = scmp.ne.s32.totalorder %s1510_s28, %s1263_s12  ;;  %p1268_p4 = scmp.lt.s32.totalorder %s1510_s28, %s1557_s4 }
 0x227   : > { %p1269_p8 = scmp.lt.s32.totalorder %s1267_s21, %s1263_s12 }
 0x228   : > { %p1265_p5 = pnand %p1264_p13, %p1573_p10 }
 0x229   : > { %p1270_p7 = por %p1269_p8, %p1268_p4 }
 0x22a   : > { %p1266_p0 = pneg %p1265_p5 }
 0x22c   : > { %p1271_p11 = pnand %p1270_p7, %p1266_p0 }
 0x22e   : > { %1274 = shalt.err (!%p1271_p11)
}
 0x22f   : > { %s1330_s7 = smov 256   ;;  %s1331_s9 = smov 16  }
 0x230   : > { %1020 = dma.vmem_to_hbm [thread:$0]  (%p1573_p10), %s1505_s8, 512, %s1510_s28, %s800_s19, %s1330_s7, %s1330_s7, %s1331_s9  }
 0x231 PF: > { %s829_s27 = sand.u32 1, %s1305_s15   ;;  %p1574_p1 = scmp.ne.s32.totalorder %s1563_s22, 0 }
 0x232   : > { %p1575_p2 = scmp.ge.s32.totalorder %s1317_s18, 2  ;;  %s830_s26 = scalar_lea.sflag [#allocation4], %s829_s27 }
 0x234   : > { %p1034_p6 = pnand %p1575_p2, %p1574_p1 }
 0x236   : > { %p1035_p12 = pneg %p1034_p6 }
 0x238   : > { %1300 = dma.done.wait (%p1035_p12), %s830_s26, 512  }
 0x239   : > { %1302 = vsyncadd (%p1035_p12), %s830_s26, 4294966784  ;;  %p18_p3 = scmp.ge.s32.totalorder %s1429_s13, 4   ;;  %s1576_s15 = smov %s1309_s16 }
 0x23a   : > { %s1577_s16 = smov %s1313_s17  ;;  %s1578_s17 = smov %s1438_s24 }
 0x23b   : > { %s1579_s18 = smov %s1429_s13  ;;  %20 = sbr.rel (!%p18_p3) target bundleno = 6 (0x6), region = 89 }
 0x240   :  { %835 = vsyncpa [#allocation3], 1 }
 0x241   :  { %837 = vsyncpa [#allocation3 + $0x1], 1 }
 0x242   :  { %838 = vsyncpa [#allocation6], 1 }
 0x243   :  { %839 = vsyncpa [#allocation4], 1 }
 0x244   :  { %841 = vsyncpa [#allocation4 + $0x1], 1 }

// kernel: tpu_custom_call.1
= control target key start
LH: loop header
LB: loop body
LE: loop exit
PB: predicated region body
PF: predicated region fallthrough
CT: control target
= control target key end

     0   :  { %9 = vsyncpa [#allocation3], 0  ;;  %s1553_s0 = inlined_call_operand.hbm [shape: bf16[32,256], index: 0, kind: input, shape index: {}]   ;;  %s1554_s1 = inlined_call_operand.hbm [shape: bf16[256,128], index: 1, kind: input, shape index: {}]   ;;  %s1555_s2 = inlined_call_operand.hbm [shape: bf16[128,512], index: 2, kind: input, shape index: {}]   ;;  %s1556_s3 = inlined_call_operand.vmem [shape: f32[1,512], index: 3, kind: input, shape index: {}]   ;;  %s1557_s4 = inlined_call_operand.hbm [shape: bf16[32,512], index: 4, kind: output, shape index: {}]  }
   0x1   :  { %11 = vsyncpa [#allocation3 + $0x1], 0 }
   0x2   :  { %12 = vsyncpa [#allocation6], 0 }
   0x3   :  { %13 = vsyncpa [#allocation4], 0 }
   0x4   :  { %15 = vsyncpa [#allocation4 + $0x1], 0  ;;  %s1357_s15 = smov 0   ;;  %s1359_s16 = smov 0  }
   0x5   :  { %s1361_s17 = smov 0   ;;  %s1363_s18 = smov 0  }
   0x6 LB: > { %s1378_s19 = sadd.s32 4294967295, %s1317_s18   ;;  %s906_s20 = sadd.s32 4294967294, %s1317_s18   ;;  %s1317_s18 = sphi %s1363_s18, %s1579_s18   ;;  %s1313_s17 = sphi %s1361_s17, %s1578_s17   ;;  %s1309_s16 = sphi %s1359_s16, %s1577_s16   ;;  %s1305_s15 = sphi %s1357_s15, %s1576_s15  }
   0x7   : > { %p41_p0 = scmp.ne.s32.totalorder %s1309_s16, %s1305_s15  ;;  %p1558_p1 = scmp.eq.s32.totalorder %s1378_s19, 0 }
   0x8   : > { %p134_p3 = scmp.eq.s32.totalorder %s906_s20, 1  ;;  %p907_p5 = scmp.ge.s32.totalorder %s1317_s18, 1 }
   0x9   : > { %p1387_p4 = por %p1558_p1, %p41_p0  ;;  %p141_p7 = scmp.lt.s32.totalorder %s1317_s18, 3 }
   0xa   : > { %p1392_p6 = por %p134_p3, %p41_p0  ;;  %s1319_s24 = smov [#allocation5]  }
   0xb   : > { %s1562_s21 = scalar_select %p1387_p4, 1, 0 }
   0xc   : > { %s1563_s22 = scalar_select %p1392_p6, 1, 0 }
   0xd   : > { %p1397_p8 = pnand %p907_p5, %p141_p7  ;;  %s153_s25 = sshll.u32 %s1319_s24, 4  ;;  %s154_s25 = int_to_ptr.vmem [resolvable:$true] %s153_s25 }
   0xe   : > { %s1320_s27 = smov [#allocation7]   ;;  %s1180_s29 = scalar_lea.vmem %s154_s25, 2048 }
   0xf   : > { %s1564_s23 = scalar_select %p1397_p8, 1, 0 }
  0x10   : > { %p1022_p9 = pneg %p1397_p8  ;;  %s166_s28 = sshll.u32 %s1320_s27, 4  ;;  %s167_s28 = int_to_ptr.vmem [resolvable:$true] %s166_s28 }
  0x11   : > { %p1181_p13 = scmp.ne.s32.totalorder %s154_s25, %s1180_s29  ;;  %p1188_p5 = scmp.lt.s32.totalorder %s154_s25, %s154_s25 }
  0x12   : > { %p1406_p11 = pnand %p1022_p9, %p1558_p1  ;;  %p1189_p7 = scmp.lt.s32.totalorder %s1180_s29, %s1180_s29 }
  0x14   : > { %p1171_p12 = pneg %p1406_p11  ;;  %p1190_p10 = por %p1189_p7, %p1188_p5 }
  0x16   : > { %p1183_p0 = pnand %p1181_p13, %p1171_p12 }
  0x18   : > { %p1184_p3 = pneg %p1183_p0 }
  0x1a   : > { %p1191_p9 = pnand %p1190_p10, %p1184_p3 }
  0x1c   : > { %1194 = shalt.err (!%p1191_p9)
}
  0x1d   : > { %s1321_s30 = smov 64   ;;  %s1322_s5 = smov 4  }
  0x1e   : > { %1025 = dma.hbm_to_vmem [thread:$0]  (!%p1406_p11), %s1554_s1, 2048, %s154_s25, [#allocation6], %s1321_s30, %s1321_s30, %s1322_s5  }
  0x1f   : > { %s1206_s8 = scalar_lea.vmem %s167_s28, 4096  ;;  %p1214_p2 = scmp.lt.s32.totalorder %s167_s28, %s167_s28 }
  0x20   : > { %p1207_p1 = scmp.ne.s32.totalorder %s167_s28, %s1206_s8  ;;  %p1215_p6 = scmp.lt.s32.totalorder %s1206_s8, %s1206_s8 }
  0x22   : > { %p1209_p13 = pnand %p1207_p1, %p1171_p12  ;;  %p1216_p5 = por %p1215_p6, %p1214_p2 }
  0x24   : > { %p1210_p0 = pneg %p1209_p13 }
  0x26   : > { %p1217_p10 = pnand %p1216_p5, %p1210_p0 }
  0x28   : > { %1220 = shalt.err (!%p1217_p10)
}
  0x29   : > { %s1323_s9 = smov 256   ;;  %s1324_s10 = smov 16  }
  0x2a   : > { %1028 = dma.hbm_to_vmem [thread:$0]  (!%p1406_p11), %s1555_s2, 4096, %s167_s28, [#allocation6], %s1323_s9, %s1323_s9, %s1324_s10  }
  0x2b   : > { %s1429_s13 = sadd.s32 1, %s1317_s18   ;;  %s28_s20 = sadd.s32 1, %s1313_s17 }
  0x2c   : > { %s25_s14 = ssub.s32 %s1317_s18, %s1429_s13  ;;  %p35_p2 = scmp.ne.s32.totalorder %s1313_s17, %s1309_s16 }
  0x2d   : > { %p26_p1 = scmp.eq.s32.totalorder %s25_s14, 0  ;;  %p36_p6 = scmp.eq.s32.totalorder %s1317_s18, 0 }
  0x2e   : > { %p1566_p3 = scmp.eq.s32.totalorder %s1378_s19, 1  ;;  %p1039_p9 = scmp.lt.s32.totalorder %s1317_s18, 2 }
  0x2f   : > { %s1438_s24 = scalar_select %p26_p1, %s1313_s17, %s28_s20  }
  0x30   : > { %p37_p12 = por %p36_p6, %p35_p2  ;;  %p1442_p7 = por %p1566_p3, %p35_p2 }
  0x31   : > { %s183_s26 = sand.u32 1, %s1313_s17   ;;  %s981_s28 = sshll.u32 %s1317_s18, 8 }
  0x32   : > { %s1567_s25 = scalar_select %p1442_p7, 1, 0 }
  0x33   : > { %s911_s27 = sshll.u32 %s183_s26, 4  ;;  %s1452_s5 = scalar_lea.hbm %s1553_s0, %s981_s28 }
  0x34   : > { %s187_s6 = scalar_lea.vmem [#allocation2], %s911_s27  ;;  %p1456_p11 = pnand %p1039_p9, %p37_p12 }
  0x35   : > { %s195_s7 = sshll.u32 %s187_s6, 4  ;;  %s1460_s9 = scalar_lea.sflag [#allocation3], %s183_s26  ;;  %s1454_s7 = int_to_ptr.vmem [resolvable:$true] %s195_s7 }
  0x36   : > { %s1221_s10 = scalar_lea.hbm %s1452_s5, 256  ;;  %p1223_p0 = pneg %p1456_p11 }
  0x37   : > { %p1222_p13 = scmp.ne.s32.totalorder %s1452_s5, %s1221_s10  ;;  %s1226_s14 = scalar_lea.hbm %s1553_s0, 512 }
  0x38   : > { %p1227_p1 = scmp.lt.s32.totalorder %s1452_s5, %s1553_s0  ;;  %p1228_p2 = scmp.lt.s32.totalorder %s1226_s14, %s1221_s10 }
  0x39   : > { %p1224_p5 = pnand %p1223_p0, %p1222_p13 }
  0x3a   : > { %p1229_p6 = por %p1228_p2, %p1227_p1 }
  0x3b   : > { %p1225_p10 = pneg %p1224_p5 }
  0x3d   : > { %p1230_p12 = pnand %p1229_p6, %p1225_p10 }
  0x3f   : > { %1233 = shalt.err (!%p1230_p12)
}
  0x40   : > { %s1234_s26 = scalar_lea.vmem %s1454_s7, 256  ;;  %s1325_s28 = smov [#allocation2]  }
  0x41   : > { %p1235_p3 = scmp.ne.s32.totalorder %s1454_s7, %s1234_s26  ;;  %s1239_s29 = sshll.u32 %s1325_s28, 4  ;;  %s1240_s29 = int_to_ptr.vmem [resolvable:$false] %s1239_s29 }
  0x42   : > { %s1241_s30 = scalar_lea.vmem %s1240_s29, 512  ;;  %p1242_p5 = scmp.lt.s32.totalorder %s1454_s7, %s1240_s29 }
  0x43   : > { %p1237_p9 = pnand %p1235_p3, %p1223_p0  ;;  %p1243_p7 = scmp.lt.s32.totalorder %s1241_s30, %s1234_s26 }
  0x45   : > { %p1238_p13 = pneg %p1237_p9  ;;  %p1244_p4 = por %p1243_p7, %p1242_p5 }
  0x47   : > { %p1245_p8 = pnand %p1244_p4, %p1238_p13 }
  0x49   : > { %1248 = shalt.err (!%p1245_p8)
}
  0x4a   : > { %s1326_s6 = smov 128   ;;  %s1327_s10 = smov 8  }
  0x4b   : > { %1032 = dma.hbm_to_vmem [thread:$0]  (!%p1456_p11), %s1452_s5, 256, %s1454_s7, %s1460_s9, %s1326_s6, %s1326_s6, %s1327_s10  }
  0x4c   : > { %p1569_p0 = scmp.ne.s32.totalorder %s1564_s23, 0 }
  0x4d   : > { %s1484_s11 = sand.u32 (!%p1569_p0), 1, %s1309_s16   ;;  %p1570_p4 = scmp.ne.s32.totalorder (!%p1569_p0), %s1562_s21, 0 }
  0x4e   : > { %207 = sbr.rel (%p1569_p0) target bundleno = 561 (0x231), region = 36  ;;  %s916_s12 = sshll.u32 (!%p1569_p0), %s1484_s11, 4 }
  0x4f   : > { %s210_s14 = scalar_lea.sflag (!%p1569_p0), [#allocation3], %s1484_s11  ;;  %s1488_s20 = scalar_lea.vmem (!%p1569_p0), [#allocation2], %s916_s12 }
  0x53   : > { %1292 = dma.done.wait (%p1570_p4), %s210_s14, 256  }
  0x54   : > { %1294 = vsyncadd (%p1570_p4), %s210_s14, 4294967040  ;;  %p1571_p8 = scmp.eq.s32.totalorder %s1378_s19, 0 }
  0x56   : > { %1296 = dma.done.wait (%p1571_p8), [#allocation6], 6144   ;;  %p1572_p7 = pmov %p1571_p8 }
  0x57   : > { %v1086_v0 = vld [vmem:[#allocation5 + $0x78] sm:$0xff]   ;;  %v1088_v2 = vld [vmem:[#allocation5 + $0x70] sm:$0xff]   ;;  %v1090_v4 = vld [vmem:[#allocation5 + $0x68] sm:$0xff]   ;;  %v1328_v50 = vmov 0   ;;  %v465_v58 = vlaneseq  ;;  %s919_s5 = sshll.u32 %s1484_s11, 5  ;;  %s987_s9 = sshll.u32 %s1378_s19, 9 }
  0x58   : > { %1298 = vsyncadd (%p1572_p7), [#allocation6], 4294961152  ;;  %v1087_v1 = vld [vmem:[#allocation5 + $0x38] sm:$0xff]   ;;  %988 = vmatprep.subr.bf16.mxu0 %v1086_v0  ;;  %v1089_v3 = vld [vmem:[#allocation5 + $0x30] sm:$0xff]   ;;  %677 = vmatprep.mubr.bf16.mxu1 %v1328_v50  ;;  %s245_s7 = scalar_lea.vmem [#allocation8], %s919_s5  ;;  %s1510_s28 = scalar_lea.hbm %s1557_s4, %s987_s9 }
  0x59   : > { %989 = vmatpush3.bf16.msra.mxu0 %v1087_v1  ;;  %v1091_v5 = vld [vmem:[#allocation5 + $0x28] sm:$0xff]   ;;  %v1092_v6 = vld [vmem:[#allocation5 + $0x60] sm:$0xff]   ;;  %v1094_v8 = vld [vmem:[#allocation5 + $0x58] sm:$0xff]   ;;  %v466_v59 = vshrl.u32 %v465_v58, 7  ;;  %s814_s8 = sshll.u32 %s245_s7, 4  ;;  %s800_s19 = scalar_lea.sflag [#allocation4], %s1484_s11  ;;  %s1505_s8 = int_to_ptr.vmem [resolvable:$true] %s814_s8 }
  0x5a   : > { %990 = vmatprep.subr.bf16.mxu0 %v1088_v2  ;;  %v1093_v7 = vld [vmem:[#allocation5 + $0x20] sm:$0xff]   ;;  %v1095_v9 = vld [vmem:[#allocation5 + $0x18] sm:$0xff]   ;;  %v1096_v10 = vld [vmem:[#allocation5 + $0x50] sm:$0xff]   ;;  %s1249_s29 = scalar_lea.vmem %s1505_s8, 512  ;;  %p1573_p10 = scmp.ne.s32.totalorder %s1567_s25, 0 }
  0x5b   : > { %v1104_v11 = vld [vmem:[%s1488_s20 + $0x4] ss:$8 sps:$4 sm:$0xff]   ;;  %v1110_v15 = vld [vmem:[#allocation7 + $0xe0] ss:$16 sps:$4 sm:$0xff]   ;;  %v1107_v27 = vld [vmem:[#allocation7 + $0xe8] ss:$16 sps:$4 sm:$0xff]   ;;  %p1250_p11 = scmp.ne.s32.totalorder %s1505_s8, %s1249_s29 }
  0x5c   : > { %v1105_v12 = vld [vmem:[#allocation7 + $0xe4] ss:$16 sps:$4 sm:$0xff]   ;;  %v1098_v14 = vld [vmem:[#allocation5 + $0x48] sm:$0xff]   ;;  %421 = vmatprep.mubr.bf16.mxu0 %v1104_v11  ;;  %v1116_v18 = vld [vmem:[#allocation7 + $0xc0] ss:$16 sps:$4 sm:$0xff]   ;;  %v467_v60 = vsub.s32 0, %v466_v59 }
  0x5d   : > { %991 = vmatpush3.bf16.msra.mxu0 %v1089_v3  ;;  %v1097_v13 = vld [vmem:[#allocation5 + $0x10] sm:$0xff]   ;;  %645 = vmatprep.subr.bf16.mxu1 %v1105_v12  ;;  %v1099_v17 = vld [vmem:[#allocation5 + $0x8] sm:$0xff]   ;;  %v1100_v20 = vld [vmem:[#allocation5 + $0x40] sm:$0xff]   ;;  %v475_v61 = vsub.s32 2, %v466_v59  ;;  %v471_v63 = vsub.s32 1, %v466_v59  ;;  %v479_v0 = vsub.s32 3, %v466_v59  ;;  %p1251_p1 = pnand %p1250_p11, %p1573_p10 }
  0x5e   : > { %992 = vmatprep.subr.bf16.mxu0 %v1090_v4  ;;  %v1111_v16 = vld [vmem:[#allocation7 + $0xc4] ss:$16 sps:$4 sm:$0xff]   ;;  %646 = vmatpush1.bf16.msra.mxu1 %v1110_v15  ;;  %v1122_v21 = vld [vmem:[#allocation7 + $0xa0] ss:$16 sps:$4 sm:$0xff]   ;;  %v1109_v25 = vld [vmem:[#allocation7 + $0xec] ss:$16 sps:$4 sm:$0xff]  }
  0x5f   : > { %647 = vmatprep.subr.bf16.mxu1 %v1111_v16  ;;  %v1117_v19 = vld [vmem:[#allocation7 + $0xa4] ss:$16 sps:$4 sm:$0xff]   ;;  %v1102_v24 = vld [vmem:[%s1488_s20] ss:$8 sps:$4 sm:$0xff]   ;;  %v1115_v29 = vld [vmem:[#allocation7 + $0xcc] ss:$16 sps:$4 sm:$0xff]   ;;  %p1252_p2 = pneg %p1251_p1 }
  0x60   : > { %v1123_v22 = vld [vmem:[#allocation7 + $0x84] ss:$16 sps:$4 sm:$0xff]   ;;  %v1128_v26 = vld [vmem:[#allocation7 + $0x80] ss:$16 sps:$4 sm:$0xff]   ;;  %v1113_v32 = vld [vmem:[#allocation7 + $0xc8] ss:$16 sps:$4 sm:$0xff]  }
  0x61   : > { %993 = vmatpush3.bf16.msra.mxu0 %v1091_v5  ;;  %v1101_v23 = vld [vmem:[#allocation5] sm:$0xff]   ;;  %v1121_v33 = vld [vmem:[#allocation7 + $0xac] ss:$16 sps:$4 sm:$0xff]   ;;  %v1119_v34 = vld [vmem:[#allocation7 + $0xa8] ss:$16 sps:$4 sm:$0xff]   ;;  %s1329_s30 = smov [#allocation8]  }
  0x62   : > { %994 = vmatprep.subr.bf16.mxu0 %v1092_v6  ;;  %648 = vmatpush1.bf16.msra.mxu1 %v1116_v18  ;;  %v1129_v28 = vld [vmem:[#allocation7 + $0x64] ss:$16 sps:$4 sm:$0xff]   ;;  %v1134_v30 = vld [vmem:[#allocation7 + $0x60] ss:$16 sps:$4 sm:$0xff]   ;;  %v1127_v35 = vld [vmem:[#allocation7 + $0x8c] ss:$16 sps:$4 sm:$0xff]  }
  0x63   : > { %649 = vmatprep.subr.bf16.mxu1 %v1117_v19  ;;  %v1135_v31 = vld [vmem:[#allocation7 + $0x44] ss:$16 sps:$4 sm:$0xff]   ;;  %v1125_v36 = vld [vmem:[#allocation7 + $0x88] ss:$16 sps:$4 sm:$0xff]   ;;  %v1133_v37 = vld [vmem:[#allocation7 + $0x6c] ss:$16 sps:$4 sm:$0xff]  }
  0x64   : > { %v1131_v38 = vld [vmem:[#allocation7 + $0x68] ss:$16 sps:$4 sm:$0xff]   ;;  %v1139_v39 = vld [vmem:[#allocation7 + $0x4c] ss:$16 sps:$4 sm:$0xff]   ;;  %v1140_v41 = vld [vmem:[#allocation7 + $0x40] ss:$16 sps:$4 sm:$0xff]  }
  0x65   : > { %995 = vmatpush3.bf16.msra.mxu0 %v1093_v7  ;;  %v1137_v40 = vld [vmem:[#allocation7 + $0x48] ss:$16 sps:$4 sm:$0xff]   ;;  %v1141_v42 = vld [vmem:[#allocation7 + $0x24] ss:$16 sps:$4 sm:$0xff]   ;;  %v1145_v43 = vld [vmem:[#allocation7 + $0x2c] ss:$16 sps:$4 sm:$0xff]  }
  0x66   : > { %996 = vmatprep.subr.bf16.mxu0 %v1094_v8  ;;  %650 = vmatpush1.bf16.msra.mxu1 %v1122_v21  ;;  %v1143_v44 = vld [vmem:[#allocation7 + $0x28] ss:$16 sps:$4 sm:$0xff]   ;;  %v1146_v45 = vld [vmem:[#allocation7 + $0x20] ss:$16 sps:$4 sm:$0xff]   ;;  %v1147_v46 = vld [vmem:[#allocation7 + $0x4] ss:$16 sps:$4 sm:$0xff]  }
  0x67   : > { %651 = vmatprep.subr.bf16.mxu1 %v1123_v22  ;;  %v1151_v47 = vld [vmem:[#allocation7 + $0xc] ss:$16 sps:$4 sm:$0xff]   ;;  %v1149_v48 = vld [vmem:[#allocation7 + $0x8] ss:$16 sps:$4 sm:$0xff]   ;;  %v1152_v49 = vld [vmem:[#allocation7] ss:$16 sps:$4 sm:$0xff]  }
  0x68   : > { %v463_v62 = vld [vmem:[%s1556_s3] sm:$0xf]  ;;  %s1253_s6 = sshll.u32 %s1329_s30, 4  ;;  %s1254_s6 = int_to_ptr.vmem [resolvable:$false] %s1253_s6 }
  0x69   : > { %997 = vmatpush3.bf16.msra.mxu0 %v1095_v9  ;;  %v468_v1 = vrot.slane %v463_v62, %v467_v60  ;;  %v476_v2 = vrot.slane %v463_v62, %v475_v61  ;;  %v472_v5 = vrot.slane %v463_v62, %v471_v63  ;;  %v480_v6 = vrot.slane %v463_v62, %v479_v0  ;;  %s1255_s10 = scalar_lea.vmem %s1254_s6, 1024  ;;  %p1256_p6 = scmp.lt.s32.totalorder %s1505_s8, %s1254_s6 }
  0x6a   : > { %998 = vmatprep.subr.bf16.mxu0 %v1096_v10  ;;  %652 = vmatpush1.bf16.msra.mxu1 %v1128_v26  ;;  %p1257_p12 = scmp.lt.s32.totalorder %s1255_s10, %s1249_s29 }
  0x6b   : > { %653 = vmatprep.subr.bf16.mxu1 %v1129_v28 }
  0x6c   : > { %p1258_p3 = por %p1257_p12, %p1256_p6 }
  0x6d   : > { %999 = vmatpush3.bf16.msra.mxu0 %v1097_v13 }
  0x6e   : > { %1000 = vmatprep.subr.bf16.mxu0 %v1098_v14  ;;  %654 = vmatpush1.bf16.msra.mxu1 %v1134_v30  ;;  %p1259_p9 = pnand %p1258_p3, %p1252_p2 }
  0x6f   : > { %655 = vmatprep.subr.bf16.mxu1 %v1135_v31 }
  0x71   : > { %1001 = vmatpush3.bf16.msra.mxu0 %v1099_v17 }
  0x72   : > { %1002 = vmatprep.subr.bf16.mxu0 %v1100_v20  ;;  %656 = vmatpush1.bf16.msra.mxu1 %v1140_v41 }
  0x73   : > { %657 = vmatprep.subr.bf16.mxu1 %v1141_v42 }
  0x75   : > { %1003 = vmatpush3.bf16.msra.mxu0 %v1101_v23 }
  0x76   : > { %688 = vmatprep.subr.bf16.mxu0 %v1109_v25  ;;  %658 = vmatpush1.bf16.msra.mxu1 %v1146_v45 }
  0x77   : > { %659 = vmatprep.subr.bf16.mxu1 %v1147_v46 }
  0x78   : > { %422 = vmatmul.mubr.bf16.vlgmr.msra.gmra.mxu0 %v1102_v24 }
  0x79   : > { %689 = vmatpush1.bf16.msra.mxu0 %v1107_v27  ;;  %720 = vmatprep.mubr.bf16.mxu0 %v1328_v50 }
  0x7a   : > { %690 = vmatprep.subr.bf16.mxu0 %v1115_v29  ;;  %660 = vmatpush1.bf16.msra.mxu1 %v1152_v49 }
  0x7d   : > { %691 = vmatpush1.bf16.msra.mxu0 %v1113_v32 }
  0x7e   : > { %692 = vmatprep.subr.bf16.mxu0 %v1121_v33 }
  0x81   : > { %693 = vmatpush1.bf16.msra.mxu0 %v1119_v34 }
  0x82   : > { %694 = vmatprep.subr.bf16.mxu0 %v1127_v35 }
  0x85   : > { %695 = vmatpush1.bf16.msra.mxu0 %v1125_v36 }
  0x86   : > { %696 = vmatprep.subr.bf16.mxu0 %v1133_v37 }
  0x89   : > { %697 = vmatpush1.bf16.msra.mxu0 %v1131_v38 }
  0x8a   : > { %698 = vmatprep.subr.bf16.mxu0 %v1139_v39 }
  0x8d   : > { %699 = vmatpush1.bf16.msra.mxu0 %v1137_v40 }
  0x8e   : > { %700 = vmatprep.subr.bf16.mxu0 %v1145_v43 }
  0x91   : > { %701 = vmatpush1.bf16.msra.mxu0 %v1143_v44 }
  0x92   : > { %702 = vmatprep.subr.bf16.mxu0 %v1151_v47 }
  0x95   : > { %703 = vmatpush1.bf16.msra.mxu0 %v1149_v48 }
 0x138   : > { %v1004_v51 = vpop.f32.mrf.mxu0 }
 0x13a   : > { %v1005_v52 = vpop.f32.mrf.mxu0 }
 0x13b   : > { %v1006_v55 = vadd.f32 %v1005_v52, %v1004_v51 }
 0x13c   : > { %v1007_v53 = vpop.f32.mrf.mxu0 }
 0x13e   : > { %v1008_v54 = vpop.f32.mrf.mxu0 }
 0x13f   : > { %v1009_v56 = vadd.f32 %v1008_v54, %v1007_v53 }
 0x141   : > { %v430_v57 = vpack.c.bf16 %v1009_v56, %v1006_v55 }
 0x143   : > { %678 = vmatmul.mubr.bf16.vlgmr.msra.gmra.mxu1 %v430_v57  ;;  %721 = vmatmul.mubr.bf16.vlgmr.msra.gmra.mxu0 %v430_v57 }
 0x203   : > { %v679_v3 = vpop.f32.mrf.mxu1  ;;  %v722_v4 = vpop.f32.mrf.mxu0 }
 0x204   : > { %v680_v7 = vadd.f32 %v679_v3, %v468_v1  ;;  %v723_v8 = vadd.f32 %v722_v4, %v476_v2 }
 0x205   : > { %v681_v9 = vpop.f32.mrf.mxu1  ;;  %v724_v10 = vpop.f32.mrf.mxu0 }
 0x206   : > { %v739_v11 = vmul.f32 0.70710677, %v680_v7  ;;  %v741_v12 = vmul.f32 0.70710677, %v723_v8  ;;  %v682_v13 = vadd.f32 %v681_v9, %v472_v5  ;;  %v725_v14 = vadd.f32 %v724_v10, %v480_v6 }
 0x207   : > { %v683_v15 = vpop.f32.mrf.mxu1  ;;  %v726_v16 = vpop.f32.mrf.mxu0  ;;  %v731_v35 = vmul.f32 0.5, %v680_v7  ;;  %v733_v39 = vmul.f32 0.5, %v723_v8 }
 0x208   : > { %1153 = verf.f32 %v739_v11  ;;  %v684_v17 = vadd.f32 %v683_v15, %v468_v1  ;;  %v727_v18 = vadd.f32 %v726_v16, %v476_v2  ;;  %v740_v19 = vmul.f32 0.70710677, %v682_v13 }
 0x209   : > { %1155 = verf.f32 %v741_v12  ;;  %v685_v20 = vpop.f32.mrf.mxu1  ;;  %v728_v21 = vpop.f32.mrf.mxu0  ;;  %v742_v22 = vmul.f32 0.70710677, %v725_v14  ;;  %v732_v36 = vmul.f32 0.5, %v682_v13  ;;  %v734_v40 = vmul.f32 0.5, %v725_v14 }
 0x20a   : > { %v743_v23 = vmul.f32 0.70710677, %v684_v17  ;;  %1157 = verf.f32 %v740_v19  ;;  %v745_v24 = vmul.f32 0.70710677, %v727_v18  ;;  %v686_v25 = vadd.f32 %v685_v20, %v472_v5 }
 0x20b   : > { %v729_v26 = vadd.f32 %v728_v21, %v480_v6  ;;  %1159 = verf.f32 %v742_v22  ;;  %v735_v52 = vmul.f32 0.5, %v684_v17  ;;  %v737_v56 = vmul.f32 0.5, %v727_v18 }
 0x20c   : > { %1161 = verf.f32 %v743_v23  ;;  %v744_v27 = vmul.f32 0.70710677, %v686_v25  ;;  %v736_v53 = vmul.f32 0.5, %v686_v25 }
 0x20d   : > { %1163 = verf.f32 %v745_v24  ;;  %v746_v28 = vmul.f32 0.70710677, %v729_v26  ;;  %v738_v57 = vmul.f32 0.5, %v729_v26 }
 0x20e   : > { %1165 = verf.f32 %v744_v27 }
 0x20f   : > { %1167 = verf.f32 %v746_v28 }
 0x215   : > { %v1154_v29 = vpop.eup %1153 }
 0x216   : > { %v1156_v30 = vpop.eup %1155  ;;  %v755_v31 = vadd.f32 1.0, %v1154_v29 }
 0x217   : > { %v1158_v32 = vpop.eup %1157  ;;  %v757_v33 = vadd.f32 1.0, %v1156_v30 }
 0x218   : > { %v1160_v34 = vpop.eup %1159  ;;  %v756_v37 = vadd.f32 1.0, %v1158_v32  ;;  %v763_v43 = vmul.f32 %v755_v31, %v731_v35 }
 0x219   : > { %v1162_v38 = vpop.eup %1161  ;;  %v758_v41 = vadd.f32 1.0, %v1160_v34  ;;  %v765_v47 = vmul.f32 %v757_v33, %v733_v39 }
 0x21a   : > { %v1164_v42 = vpop.eup %1163  ;;  %v764_v44 = vmul.f32 %v756_v37, %v732_v36  ;;  %v759_v45 = vadd.f32 1.0, %v1162_v38 }
 0x21b   : > { %v1166_v46 = vpop.eup %1165  ;;  %v766_v48 = vmul.f32 %v758_v41, %v734_v40  ;;  %v761_v49 = vadd.f32 1.0, %v1164_v42 }
 0x21c   : > { %v1168_v50 = vpop.eup %1167  ;;  %v982_v51 = vpack.c.bf16 %v764_v44, %v763_v43  ;;  %v760_v54 = vadd.f32 1.0, %v1166_v46  ;;  %v767_v59 = vmul.f32 %v759_v45, %v735_v52 }
 0x21d   : > { %v983_v55 = vpack.c.bf16 %v766_v48, %v765_v47  ;;  %v762_v58 = vadd.f32 1.0, %v1168_v50  ;;  %v769_v61 = vmul.f32 %v761_v49, %v737_v56 }
 0x21e   : > { %795 = vst [vmem:[%s245_s7] sm:$0xff] %v982_v51  ;;  %v768_v60 = vmul.f32 %v760_v54, %v736_v53 }
 0x21f   : > { %796 = vst [vmem:[%s245_s7 + $0x8] sm:$0xff] %v983_v55  ;;  %v770_v62 = vmul.f32 %v762_v58, %v738_v57 }
 0x220   : > { %v984_v63 = vpack.c.bf16 %v768_v60, %v767_v59 }
 0x221   : > { %v985_v0 = vpack.c.bf16 %v770_v62, %v769_v61 }
 0x222   : > { %797 = vst [vmem:[%s245_s7 + $0x10] sm:$0xff] %v984_v63 }
 0x223   : > { %798 = vst [vmem:[%s245_s7 + $0x18] sm:$0xff] %v985_v0 }
 0x224   : > { %1262 = shalt.err (!%p1259_p9)
}
 0x225   : > { %s1263_s12 = scalar_lea.hbm %s1510_s28, 512  ;;  %s1267_s21 = scalar_lea.hbm %s1557_s4, 1024 }
 0x226   : > { %p1264_p13 = scmp.ne.s32.totalorder %s1510_s28, %s1263_s12  ;;  %p1268_p4 = scmp.lt.s32.totalorder %s1510_s28, %s1557_s4 }
 0x227   : > { %p1269_p8 = scmp.lt.s32.totalorder %s1267_s21, %s1263_s12 }
 0x228   : > { %p1265_p5 = pnand %p1264_p13, %p1573_p10 }
 0x229   : > { %p1270_p7 = por %p1269_p8, %p1268_p4 }
 0x22a   : > { %p1266_p0 = pneg %p1265_p5 }
 0x22c   : > { %p1271_p11 = pnand %p1270_p7, %p1266_p0 }
 0x22e   : > { %1274 = shalt.err (!%p1271_p11)
}
 0x22f   : > { %s1330_s7 = smov 256   ;;  %s1331_s9 = smov 16  }
 0x230   : > { %1020 = dma.vmem_to_hbm [thread:$0]  (%p1573_p10), %s1505_s8, 512, %s1510_s28, %s800_s19, %s1330_s7, %s1330_s7, %s1331_s9  }
 0x231 PF: > { %s829_s27 = sand.u32 1, %s1305_s15   ;;  %p1574_p1 = scmp.ne.s32.totalorder %s1563_s22, 0 }
 0x232   : > { %p1575_p2 = scmp.ge.s32.totalorder %s1317_s18, 2  ;;  %s830_s26 = scalar_lea.sflag [#allocation4], %s829_s27 }
 0x234   : > { %p1034_p6 = pnand %p1575_p2, %p1574_p1 }
 0x236   : > { %p1035_p12 = pneg %p1034_p6 }
 0x238   : > { %1300 = dma.done.wait (%p1035_p12), %s830_s26, 512  }
 0x239   : > { %1302 = vsyncadd (%p1035_p12), %s830_s26, 4294966784  ;;  %p18_p3 = scmp.ge.s32.totalorder %s1429_s13, 4   ;;  %s1576_s15 = smov %s1309_s16 }
 0x23a   : > { %s1577_s16 = smov %s1313_s17  ;;  %s1578_s17 = smov %s1438_s24 }
 0x23b   : > { %s1579_s18 = smov %s1429_s13  ;;  %20 = sbr.rel (!%p18_p3) target bundleno = 6 (0x6), region = 89 }
 0x240   :  { %835 = vsyncpa [#allocation3], 1 }
 0x241   :  { %837 = vsyncpa [#allocation3 + $0x1], 1 }
 0x242   :  { %838 = vsyncpa [#allocation6], 1 }
 0x243   :  { %839 = vsyncpa [#allocation4], 1 }
 0x244   :  { %841 = vsyncpa [#allocation4 + $0x1], 1 }

</bundles_post_ra>
